<compile_context>
chip_gen: v7x
topology: tpu7x:2x2x1
jax: 0.10.0
libtpu: 0.0.40
codegen_flags: <defaults>
</compile_context>

<pallas_src>
import functools

import jax
import jax.numpy as jnp
from jax import lax
from jax.experimental import pallas as pl
from jax.experimental.pallas import tpu as pltpu


def _round_up(x, m):
    return (x + m - 1) // m * m


def _rnn_seq_kernel(x_ref, h0_ref, wx_ref, wh_ref, b_ref,   # inputs
                    out_ref, hid_ref,                        # outputs
                    h_scr,                                   # scratch
                    *, hidden_pad, num_classes):
    t = pl.program_id(0)

    # Initialize the VMEM hidden-state carry from h0 on the first step.
    @pl.when(t == 0)
    def _init():
        h_scr[...] = h0_ref[...]

    x = x_ref[0]                      # (Bp, Ip)  f32
    h = h_scr[...]                    # (Bp, Hp)  f32

    # Fused i2h + i2o: one (Bp, Hp+Cp) accumulator; both linears share the LHS.
    acc = jnp.dot(x, wx_ref[...], preferred_element_type=jnp.float32)
    acc = acc + jnp.dot(h, wh_ref[...], preferred_element_type=jnp.float32)
    acc = acc + b_ref[...]

    new_h = acc[:, :hidden_pad]       # (Bp, Hp)  128-aligned column slice
    logits = acc[:, hidden_pad:]      # (Bp, Cp)  128-aligned column slice

    # Carry hidden in VMEM; resident output block gets the latest value too.
    h_scr[...] = new_h
    hid_ref[...] = new_h.astype(hid_ref.dtype)

    # Numerically stable log_softmax over class lanes; mask padded lanes.
    bp, cp = logits.shape
    lane = lax.broadcasted_iota(jnp.int32, (bp, cp), 1)
    logits = jnp.where(lane < num_classes, logits, jnp.float32(-1e30))
    m = jnp.max(logits, axis=-1, keepdims=True)
    shifted = logits - m
    lse = jnp.log(jnp.sum(jnp.exp(shifted), axis=-1, keepdims=True))
    out_ref[0] = (shifted - lse).astype(out_ref.dtype)


@jax.jit
def rnn_sequence(xs, h0, w_i2h, b_i2h, w_i2o, b_i2o):
    """Run the RNN over a whole sequence inside a single pallas_call.

    xs: (T, B, I)   h0: (B, H)
    w_i2h: (H, I+H)  b_i2h: (H,)   (PyTorch nn.Linear layout)
    w_i2o: (C, I+H)  b_i2o: (C,)
    Returns (log_softmax outputs (T, B, C), final hidden (B, H)).
    """
    T, B, I = xs.shape
    H = w_i2h.shape[0]
    C = w_i2o.shape[0]

    f32 = jnp.float32
    Bp = _round_up(max(B, 8), 8)      # sublane-dense batch
    Ip = _round_up(I, 128)            # lane-aligned input features
    Hp = _round_up(H, 128)            # lane-dense hidden
    Cp = _round_up(C, 128)            # lane-dense classes
    P = Hp + Cp                       # fused output width

    xs = xs.astype(f32)
    h0 = h0.astype(f32)

    # Pad batch (sublanes) / features (lanes) with zeros.
    xs_p = jnp.zeros((T, Bp, Ip), f32).at[:, :B, :I].set(xs)
    h0_p = jnp.zeros((Bp, Hp), f32).at[:B, :H].set(h0)

    # Fused, pre-transposed, zero-padded weights (done once per call):
    #   columns [0:H)     -> i2h, columns [Hp:Hp+C) -> i2o
    #   wx rows multiply x features, wh rows multiply the (padded) hidden.
    wT_h = jnp.asarray(w_i2h, f32).T          # (I+H, H)
    wT_o = jnp.asarray(w_i2o, f32).T          # (I+H, C)
    wx = jnp.zeros((Ip, P), f32)
    wx = wx.at[:I, :H].set(wT_h[:I])
    wx = wx.at[:I, Hp:Hp + C].set(wT_o[:I])
    wh = jnp.zeros((Hp, P), f32)
    wh = wh.at[:H, :H].set(wT_h[I:])
    wh = wh.at[:H, Hp:Hp + C].set(wT_o[I:])
    b = jnp.zeros((1, P), f32)
    b = b.at[0, :H].set(jnp.asarray(b_i2h, f32))
    b = b.at[0, Hp:Hp + C].set(jnp.asarray(b_i2o, f32))

    kernel = functools.partial(_rnn_seq_kernel, hidden_pad=Hp, num_classes=C)

    out_p, hT_p = pl.pallas_call(
        kernel,
        out_shape=(
            jax.ShapeDtypeStruct((T, Bp, Cp), f32),   # per-step log-softmax
            jax.ShapeDtypeStruct((Bp, Hp), f32),      # final hidden
        ),
        grid_spec=pltpu.PrefetchScalarGridSpec(
            num_scalar_prefetch=0,
            grid=(T,),
            in_specs=[
                pl.BlockSpec((1, Bp, Ip), lambda t: (t, 0, 0)),   # x[t]
                pl.BlockSpec((Bp, Hp), lambda t: (0, 0)),         # h0 (resident)
                pl.BlockSpec((Ip, P), lambda t: (0, 0)),          # W_x (resident)
                pl.BlockSpec((Hp, P), lambda t: (0, 0)),          # W_h (resident)
                pl.BlockSpec((1, P), lambda t: (0, 0)),           # bias (resident)
            ],
            out_specs=(
                pl.BlockSpec((1, Bp, Cp), lambda t: (t, 0, 0)),   # output[t]
                pl.BlockSpec((Bp, Hp), lambda t: (0, 0)),         # hidden (resident)
            ),
            scratch_shapes=[pltpu.VMEM((Bp, Hp), f32)],           # hidden carry
        ),
        compiler_params=pltpu.CompilerParams(
            # Time is a sequential carry. For multi-sequence workloads on v7x,
            # add a leading "parallel" batch-of-sequences grid axis.
            dimension_semantics=("arbitrary",),
        ),
    )(xs_p, h0_p, wx, wh, b)

    return out_p[:, :B, :C], hT_p[:B, :H]


def rnn_cell(x, h, w_i2h, b_i2h, w_i2o, b_i2o):
    """Single step — exact PyTorch forward(input, hidden) semantics."""
    out, new_h = rnn_sequence(x[None], h, w_i2h, b_i2h, w_i2o, b_i2o)
    return out[0], new_h


def _init_linear(key, out_features, in_features):
    # Deterministic init mimicking nn.Linear: U(-1/sqrt(fan_in), 1/sqrt(fan_in))
    kw, kb = jax.random.split(key)
    bound = 1.0 / jnp.sqrt(jnp.float32(in_features))
    w = jax.random.uniform(kw, (out_features, in_features), jnp.float32, -bound, bound)
    b = jax.random.uniform(kb, (out_features,), jnp.float32, -bound, bound)
    return w, b


def _ref_step(x, h, w_i2h, b_i2h, w_i2o, b_i2o):
    combined = jnp.concatenate([x, h], axis=1)
    new_h = combined @ w_i2h.T + b_i2h
    out = jax.nn.log_softmax(combined @ w_i2o.T + b_i2o, axis=1)
    return out, new_h


if __name__ == "__main__":
    batch, input_size, hidden_size, num_classes, seq_len = 2, 16, 32, 8, 8

    key = jax.random.PRNGKey(0)
    k_x, k_i2h, k_i2o = jax.random.split(key, 3)

    xs = jax.random.normal(k_x, (seq_len, batch, input_size), jnp.float32)
    h0 = jnp.zeros((batch, hidden_size), jnp.float32)   # init_hidden, broadcast over batch

    w_i2h, b_i2h = _init_linear(k_i2h, hidden_size, input_size + hidden_size)
    w_i2o, b_i2o = _init_linear(k_i2o, num_classes, input_size + hidden_size)

    # Fused-sequence kernel: the whole time loop is one pallas_call.
    outs, hT = rnn_sequence(xs, h0, w_i2h, b_i2h, w_i2o, b_i2o)
    jax.block_until_ready((outs, hT))

    # Reference: plain-JAX per-step loop with the module's exact math.
    h = h0
    ref_outs = []
    for t in range(seq_len):
        o, h = _ref_step(xs[t], h, w_i2h, b_i2h, w_i2o, b_i2o)
        ref_outs.append(o)
    ref_outs = jnp.stack(ref_outs)

    assert jnp.allclose(outs, ref_outs, atol=1e-4, rtol=1e-4), "sequence outputs mismatch"
    assert jnp.allclose(hT, h, atol=1e-4, rtol=1e-4), "final hidden mismatch"

    # Single-step path (matches the module's forward(input, hidden)).
    out1, h1 = rnn_cell(xs[0], h0, w_i2h, b_i2h, w_i2o, b_i2o)
    ref_o1, ref_h1 = _ref_step(xs[0], h0, w_i2h, b_i2h, w_i2o, b_i2o)
    assert jnp.allclose(out1, ref_o1, atol=1e-4, rtol=1e-4), "single-step output mismatch"
    assert jnp.allclose(h1, ref_h1, atol=1e-4, rtol=1e-4), "single-step hidden mismatch"

    print("KERNEL_OK")
</pallas_src>

<mosaic_0001>
module attributes {stable_mosaic.version = 11 : i64} {
  func.func @_rnn_seq_kernel(%arg0: i32, %arg1: memref<1x8x128xf32, #tpu.memory_space<vmem>>, %arg2: memref<8x128xf32, #tpu.memory_space<vmem>>, %arg3: memref<128x256xf32, #tpu.memory_space<vmem>>, %arg4: memref<128x256xf32, #tpu.memory_space<vmem>>, %arg5: memref<1x256xf32, #tpu.memory_space<vmem>>, %arg6: memref<1x8x128xf32, #tpu.memory_space<vmem>>, %arg7: memref<8x128xf32, #tpu.memory_space<vmem>>, %arg8: memref<8x128xf32, #tpu.memory_space<vmem>>) attributes {dimension_semantics = [#tpu.dimension_semantics<arbitrary>], iteration_bounds = array<i64: 8>, scalar_prefetch = 0 : i64, scratch_operands = 1 : i64, tpu.core_type = #tpu.core_type<tc>, window_params = [{transform_indices = @transform_0, window_bounds = array<i64: 1, 8, 128>}, {pipeline_mode = #tpu.pipeline_mode<synchronous>, transform_indices = @transform_1, window_bounds = array<i64: 8, 128>}, {pipeline_mode = #tpu.pipeline_mode<synchronous>, transform_indices = @transform_2, window_bounds = array<i64: 128, 256>}, {pipeline_mode = #tpu.pipeline_mode<synchronous>, transform_indices = @transform_3, window_bounds = array<i64: 128, 256>}, {pipeline_mode = #tpu.pipeline_mode<synchronous>, transform_indices = @transform_4, window_bounds = array<i64: 1, 256>}, {transform_indices = @transform_5, window_bounds = array<i64: 1, 8, 128>}, {pipeline_mode = #tpu.pipeline_mode<synchronous>, transform_indices = @transform_6, window_bounds = array<i64: 8, 128>}]} {
    %c0_i32 = arith.constant 0 : i32
    %0 = arith.cmpi eq, %arg0, %c0_i32 : i32
    %1 = arith.extui %0 : i1 to i32
    %c0_i32_0 = arith.constant 0 : i32
    %2 = arith.cmpi ne, %1, %c0_i32_0 : i32
    scf.if %2 {
      %c0_22 = arith.constant 0 : index
      %c0_23 = arith.constant 0 : index
      %36 = vector.load %arg2[%c0_22, %c0_23] : memref<8x128xf32, #tpu.memory_space<vmem>>, vector<8x128xf32>
      %c0_24 = arith.constant 0 : index
      %c0_25 = arith.constant 0 : index
      %37 = vector.load %arg8[%c0_24, %c0_25] : memref<8x128xf32, #tpu.memory_space<vmem>>, vector<8x128xf32>
      tpu.vector_store %arg8[%c0_24, %c0_25], %36 {strides = array<i32>} : memref<8x128xf32, #tpu.memory_space<vmem>>, vector<8x128xf32>,
    } else {
    }
    %c0 = arith.constant 0 : index
    %c0_1 = arith.constant 0 : index
    %c0_2 = arith.constant 0 : index
    %3 = vector.load %arg1[%c0, %c0_1, %c0_2] : memref<1x8x128xf32, #tpu.memory_space<vmem>>, vector<1x8x128xf32>
    %4 = vector.shape_cast %3 : vector<1x8x128xf32> to vector<8x128xf32>
    %c0_3 = arith.constant 0 : index
    %c0_4 = arith.constant 0 : index
    %5 = vector.load %arg8[%c0_3, %c0_4] : memref<8x128xf32, #tpu.memory_space<vmem>>, vector<8x128xf32>
    %c0_5 = arith.constant 0 : index
    %c0_6 = arith.constant 0 : index
    %6 = vector.load %arg3[%c0_5, %c0_6] : memref<128x256xf32, #tpu.memory_space<vmem>>, vector<128x256xf32>
    %cst = arith.constant dense<0.000000e+00> : vector<8x256xf32>
    %7 = tpu.matmul %4, %6, %cst {dimension_numbers = #tpu.dot_dimension_numbers<[1], [0], [0], [1], [0, 0, 1, 1], [], []>} : vector<8x128xf32>, vector<128x256xf32>, vector<8x256xf32> -> vector<8x256xf32>
    %c0_7 = arith.constant 0 : index
    %c0_8 = arith.constant 0 : index
    %8 = vector.load %arg4[%c0_7, %c0_8] : memref<128x256xf32, #tpu.memory_space<vmem>>, vector<128x256xf32>
    %cst_9 = arith.constant dense<0.000000e+00> : vector<8x256xf32>
    %9 = tpu.matmul %5, %8, %cst_9 {dimension_numbers = #tpu.dot_dimension_numbers<[1], [0], [0], [1], [0, 0, 1, 1], [], []>} : vector<8x128xf32>, vector<128x256xf32>, vector<8x256xf32> -> vector<8x256xf32>
    %10 = arith.addf %7, %9 : vector<8x256xf32>
    %c0_10 = arith.constant 0 : index
    %c0_11 = arith.constant 0 : index
    %11 = vector.load %arg5[%c0_10, %c0_11] : memref<1x256xf32, #tpu.memory_space<vmem>>, vector<1x256xf32>
    %12 = vector.broadcast %11 : vector<1x256xf32> to vector<8x256xf32>
    %13 = arith.addf %10, %12 : vector<8x256xf32>
    %14 = vector.extract_strided_slice %13 {offsets = [0, 0], sizes = [8, 128], strides = [1, 1]} : vector<8x256xf32> to vector<8x128xf32>
    %15 = vector.extract_strided_slice %13 {offsets = [0, 128], sizes = [8, 128], strides = [1, 1]} : vector<8x256xf32> to vector<8x128xf32>
    %c0_12 = arith.constant 0 : index
    %c0_13 = arith.constant 0 : index
    %16 = vector.load %arg8[%c0_12, %c0_13] : memref<8x128xf32, #tpu.memory_space<vmem>>, vector<8x128xf32>
    tpu.vector_store %arg8[%c0_12, %c0_13], %14 {strides = array<i32>} : memref<8x128xf32, #tpu.memory_space<vmem>>, vector<8x128xf32>,
    %c0_14 = arith.constant 0 : index
    %c0_15 = arith.constant 0 : index
    %17 = vector.load %arg7[%c0_14, %c0_15] : memref<8x128xf32, #tpu.memory_space<vmem>>, vector<8x128xf32>
    tpu.vector_store %arg7[%c0_14, %c0_15], %14 {strides = array<i32>} : memref<8x128xf32, #tpu.memory_space<vmem>>, vector<8x128xf32>,
    %18 = tpu.iota {dimensions = array<i32: 1>} : vector<8x128xi32>
    %c8_i32 = arith.constant 8 : i32
    %19 = vector.broadcast %c8_i32 : i32 to vector<8x128xi32>
    %20 = arith.cmpi slt, %18, %19 : vector<8x128xi32>
    %cst_16 = arith.constant -1.000000e+30 : f32
    %21 = vector.broadcast %cst_16 : f32 to vector<8x128xf32>
    %22 = arith.select %20, %15, %21 : vector<8x128xi1>, vector<8x128xf32>
    %cst_17 = arith.constant dense<0xFF800000> : vector<8xf32>
    %23 = vector.multi_reduction <maximumf>, %22, %cst_17 [1] : vector<8x128xf32> to vector<8xf32>
    %24 = vector.shape_cast %23 : vector<8xf32> to vector<8x1xf32>
    %25 = vector.broadcast %24 : vector<8x1xf32> to vector<8x128xf32>
    %26 = arith.subf %22, %25 : vector<8x128xf32>
    %27 = math.exp %26 : vector<8x128xf32>
    %cst_18 = arith.constant dense<0.000000e+00> : vector<8xf32>
    %28 = vector.multi_reduction <add>, %27, %cst_18 [1] : vector<8x128xf32> to vector<8xf32>
    %29 = vector.shape_cast %28 : vector<8xf32> to vector<8x1xf32>
    %30 = math.log %29 : vector<8x1xf32>
    %31 = vector.broadcast %30 : vector<8x1xf32> to vector<8x128xf32>
    %32 = arith.subf %26, %31 : vector<8x128xf32>
    %c0_19 = arith.constant 0 : index
    %c0_20 = arith.constant 0 : index
    %c0_21 = arith.constant 0 : index
    %33 = vector.load %arg6[%c0_19, %c0_20, %c0_21] : memref<1x8x128xf32, #tpu.memory_space<vmem>>, vector<1x8x128xf32>
    %34 = vector.shape_cast %33 : vector<1x8x128xf32> to vector<8x128xf32>
    %35 = vector.shape_cast %32 : vector<8x128xf32> to vector<1x8x128xf32>
    tpu.vector_store %arg6[%c0_19, %c0_20, %c0_21], %35 {strides = array<i32>} : memref<1x8x128xf32, #tpu.memory_space<vmem>>, vector<1x8x128xf32>,
    return
  }
  func.func @transform_0(%arg0: i32) -> (i32, i32, i32) {
    %c0_i32 = arith.constant 0 : i32
    %c0_i32_0 = arith.constant 0 : i32
    %c0_i32_1 = arith.constant 0 : i32
    return %arg0, %c0_i32, %c0_i32_0 : i32, i32, i32
  }
  func.func @transform_1(%arg0: i32) -> (i32, i32) {
    %c0_i32 = arith.constant 0 : i32
    %c0_i32_0 = arith.constant 0 : i32
    %c0_i32_1 = arith.constant 0 : i32
    return %c0_i32, %c0_i32_0 : i32, i32
  }
  func.func @transform_2(%arg0: i32) -> (i32, i32) {
    %c0_i32 = arith.constant 0 : i32
    %c0_i32_0 = arith.constant 0 : i32
    %c0_i32_1 = arith.constant 0 : i32
    return %c0_i32, %c0_i32_0 : i32, i32
  }
  func.func @transform_3(%arg0: i32) -> (i32, i32) {
    %c0_i32 = arith.constant 0 : i32
    %c0_i32_0 = arith.constant 0 : i32
    %c0_i32_1 = arith.constant 0 : i32
    return %c0_i32, %c0_i32_0 : i32, i32
  }
  func.func @transform_4(%arg0: i32) -> (i32, i32) {
    %c0_i32 = arith.constant 0 : i32
    %c0_i32_0 = arith.constant 0 : i32
    %c0_i32_1 = arith.constant 0 : i32
    return %c0_i32, %c0_i32_0 : i32, i32
  }
  func.func @transform_5(%arg0: i32) -> (i32, i32, i32) {
    %c0_i32 = arith.constant 0 : i32
    %c0_i32_0 = arith.constant 0 : i32
    %c0_i32_1 = arith.constant 0 : i32
    return %arg0, %c0_i32, %c0_i32_0 : i32, i32, i32
  }
  func.func @transform_6(%arg0: i32) -> (i32, i32) {
    %c0_i32 = arith.constant 0 : i32
    %c0_i32_0 = arith.constant 0 : i32
    %c0_i32_1 = arith.constant 0 : i32
    return %c0_i32, %c0_i32_0 : i32, i32
  }
}

</mosaic_0001>

<bundles_post_ra>
// kernel: rnn_sequence.1
= control target key start
LH: loop header
LB: loop body
LE: loop exit
PB: predicated region body
PF: predicated region fallthrough
CT: control target
= control target key end

     0   :  { %s682_s21 = smov 0   ;;  %s906_s0 = inlined_call_operand.vmem [shape: f32[8,8,128], index: 0, kind: input, shape index: {}]   ;;  %s907_s1 = inlined_call_operand.vmem [shape: f32[8,128], index: 1, kind: input, shape index: {}]   ;;  %s908_s2 = inlined_call_operand.vmem [shape: f32[128,256], index: 2, kind: input, shape index: {}]   ;;  %s909_s3 = inlined_call_operand.vmem [shape: f32[128,256], index: 3, kind: input, shape index: {}]   ;;  %s910_s4 = inlined_call_operand.vmem [shape: f32[1,256], index: 4, kind: input, shape index: {}]   ;;  %s911_s5 = inlined_call_operand.vmem [shape: f32[8,8,128], index: 5, kind: output, shape index: {0}]   ;;  %s912_s6 = inlined_call_operand.vmem [shape: f32[8,128], index: 6, kind: output, shape index: {1}]  }
   0x1 LB: > { %s549_s22 = sadd.s32 4294967295, %s644_s21   ;;  %p553_p0 = scmp.ge.s32.totalorder %s644_s21, 1  ;;  %s644_s21 = sphi %s682_s21, %s17_s21  }
   0x2   : > { %p209_p1 = scmp.lt.s32.totalorder %s644_s21, 9 }
   0x4   : > { %p210_p2 = pnand %p553_p0, %p209_p1 }
   0x5   : > { %p237_p3 = scmp.lt.s32.totalorder (!%p210_p2), %s549_s22, 7  ;;  %p556_p4 = scmp.ne.s32.totalorder (!%p210_p2), %s549_s22, 0 }
   0x6   : > { %213 = sbr.rel (%p210_p2) target bundleno = 590 (0x24e), region = 40 }
   0xd   : > { %s238_s23 = scalar_select %p237_p3, %s549_s22, 7 }
   0xe   : > { %248 = sbr.rel (%p556_p4) target bundleno = 21 (0x15), region = 44  ;;  %v249_v0 = vld [vmem:[%s907_s1] sm:$0xff] (!%p556_p4) }
   0xf   : > { %s554_s24 = sshll.u32 %s238_s23, 3  ;;  %250 = vst [vmem:[#allocation2] sm:$0xff] (!%p556_p4), %v249_v0 }
  0x10   : > { %s693_s27 = scalar_lea.vmem %s906_s0, %s554_s24  ;;  %s698_s30 = scalar_lea.vmem %s911_s5, %s554_s24 }
  0x15 PF: > { %v286_v1 = vld [vmem:[%s909_s3 + $0x8] sm:$0xff]  ;;  %v288_v2 = vld [vmem:[%s909_s3 + $0x18] sm:$0xff]  ;;  %v285_v6 = vld [vmem:[%s909_s3] sm:$0xff]  ;;  %v646_v8 = vmov 0.0  }
  0x16   : > { %v254_v3 = vld [vmem:[%s908_s2 + $0x8] sm:$0xff]  ;;  %v559_v4 = vpack.c.bf16 %v288_v2, %v286_v1  ;;  %v256_v5 = vld [vmem:[%s908_s2 + $0x18] sm:$0xff]  ;;  %v287_v7 = vld [vmem:[%s909_s3 + $0x10] sm:$0xff]  ;;  %381 = vmatprep.mubr.f32.mxu1 %v646_v8  ;;  %452 = vmatprep.mubr.f32.mxu0 %v646_v8 }
  0x17   : > { %v591_v9 = vpack.c.bf16 %v256_v5, %v254_v3  ;;  %v561_v10 = vpack.c.bf16 %v287_v7, %v285_v6  ;;  %v253_v11 = vld [vmem:[%s908_s2] sm:$0xff]  ;;  %v255_v12 = vld [vmem:[%s908_s2 + $0x10] sm:$0xff]  ;;  %v290_v13 = vld [vmem:[%s909_s3 + $0x28] sm:$0xff] }
  0x18   : > { %560 = vmatprep.subr.bf16.mxu1 %v559_v4  ;;  %v593_v14 = vpack.c.bf16 %v255_v12, %v253_v11  ;;  %v292_v15 = vld [vmem:[%s909_s3 + $0x38] sm:$0xff]  ;;  %v258_v16 = vld [vmem:[%s908_s2 + $0x28] sm:$0xff]  ;;  %v289_v20 = vld [vmem:[%s909_s3 + $0x20] sm:$0xff] }
  0x19   : > { %v260_v17 = vld [vmem:[%s908_s2 + $0x38] sm:$0xff]  ;;  %592 = vmatprep.subr.bf16.mxu0 %v591_v9  ;;  %562 = vmatpush1.bf16.msra.mxu1 %v561_v10  ;;  %v563_v18 = vpack.c.bf16 %v292_v15, %v290_v13  ;;  %v291_v21 = vld [vmem:[%s909_s3 + $0x30] sm:$0xff]  ;;  %v257_v22 = vld [vmem:[%s908_s2 + $0x20] sm:$0xff] }
  0x1a   : > { %v595_v19 = vpack.c.bf16 %v260_v17, %v258_v16  ;;  %594 = vmatpush1.bf16.msra.mxu0 %v593_v14  ;;  %v565_v23 = vpack.c.bf16 %v291_v21, %v289_v20  ;;  %v259_v24 = vld [vmem:[%s908_s2 + $0x30] sm:$0xff]  ;;  %v294_v25 = vld [vmem:[%s909_s3 + $0x48] sm:$0xff]  ;;  %v296_v26 = vld [vmem:[%s909_s3 + $0x58] sm:$0xff] }
  0x1b   : > { %564 = vmatprep.subr.bf16.mxu1 %v563_v18  ;;  %v597_v27 = vpack.c.bf16 %v259_v24, %v257_v22  ;;  %v567_v28 = vpack.c.bf16 %v296_v26, %v294_v25  ;;  %v262_v29 = vld [vmem:[%s908_s2 + $0x48] sm:$0xff]  ;;  %v264_v30 = vld [vmem:[%s908_s2 + $0x58] sm:$0xff]  ;;  %v293_v31 = vld [vmem:[%s909_s3 + $0x40] sm:$0xff] }
  0x1c   : > { %596 = vmatprep.subr.bf16.mxu0 %v595_v19  ;;  %v599_v32 = vpack.c.bf16 %v264_v30, %v262_v29  ;;  %v295_v33 = vld [vmem:[%s909_s3 + $0x50] sm:$0xff]  ;;  %v261_v34 = vld [vmem:[%s908_s2 + $0x40] sm:$0xff]  ;;  %v298_v37 = vld [vmem:[%s909_s3 + $0x68] sm:$0xff] }
  0x1d   : > { %v263_v35 = vld [vmem:[%s908_s2 + $0x50] sm:$0xff]  ;;  %566 = vmatpush1.bf16.msra.mxu1 %v565_v23  ;;  %v569_v36 = vpack.c.bf16 %v295_v33, %v293_v31  ;;  %v300_v38 = vld [vmem:[%s909_s3 + $0x78] sm:$0xff]  ;;  %v266_v39 = vld [vmem:[%s908_s2 + $0x68] sm:$0xff] }
  0x1e   : > { %598 = vmatpush1.bf16.msra.mxu0 %v597_v27  ;;  %568 = vmatprep.subr.bf16.mxu1 %v567_v28  ;;  %v601_v40 = vpack.c.bf16 %v263_v35, %v261_v34  ;;  %v571_v41 = vpack.c.bf16 %v300_v38, %v298_v37  ;;  %v268_v42 = vld [vmem:[%s908_s2 + $0x78] sm:$0xff]  ;;  %v297_v43 = vld [vmem:[%s909_s3 + $0x60] sm:$0xff]  ;;  %v299_v44 = vld [vmem:[%s909_s3 + $0x70] sm:$0xff] }
  0x1f   : > { %600 = vmatprep.subr.bf16.mxu0 %v599_v32  ;;  %v603_v45 = vpack.c.bf16 %v268_v42, %v266_v39  ;;  %v265_v46 = vld [vmem:[%s908_s2 + $0x60] sm:$0xff]  ;;  %v267_v47 = vld [vmem:[%s908_s2 + $0x70] sm:$0xff]  ;;  %v302_v48 = vld [vmem:[%s909_s3 + $0x88] sm:$0xff]  ;;  %v573_v52 = vpack.c.bf16 %v299_v44, %v297_v43 }
  0x20   : > { %v304_v49 = vld [vmem:[%s909_s3 + $0x98] sm:$0xff]  ;;  %v270_v50 = vld [vmem:[%s908_s2 + $0x88] sm:$0xff]  ;;  %v605_v53 = vpack.c.bf16 %v267_v47, %v265_v46  ;;  %v301_v55 = vld [vmem:[%s909_s3 + $0x80] sm:$0xff] }
  0x21   : > { %v272_v51 = vld [vmem:[%s908_s2 + $0x98] sm:$0xff]  ;;  %570 = vmatpush1.bf16.msra.mxu1 %v569_v36  ;;  %v575_v54 = vpack.c.bf16 %v304_v49, %v302_v48  ;;  %v303_v56 = vld [vmem:[%s909_s3 + $0x90] sm:$0xff]  ;;  %v269_v57 = vld [vmem:[%s908_s2 + $0x80] sm:$0xff]  ;;  %v461_v36 = vlaneseq }
  0x22   : > { %602 = vmatpush1.bf16.msra.mxu0 %v601_v40  ;;  %572 = vmatprep.subr.bf16.mxu1 %v571_v41  ;;  %v607_v58 = vpack.c.bf16 %v272_v51, %v270_v50  ;;  %v271_v59 = vld [vmem:[%s908_s2 + $0x90] sm:$0xff]  ;;  %v306_v60 = vld [vmem:[%s909_s3 + $0xa8] sm:$0xff]  ;;  %v308_v61 = vld [vmem:[%s909_s3 + $0xb8] sm:$0xff]  ;;  %v577_v0 = vpack.c.bf16 %v303_v56, %v301_v55 }
  0x23   : > { %604 = vmatprep.subr.bf16.mxu0 %v603_v45  ;;  %v274_v62 = vld [vmem:[%s908_s2 + $0xa8] sm:$0xff]  ;;  %v276_v63 = vld [vmem:[%s908_s2 + $0xb8] sm:$0xff]  ;;  %v609_v1 = vpack.c.bf16 %v271_v59, %v269_v57  ;;  %v579_v2 = vpack.c.bf16 %v308_v61, %v306_v60  ;;  %v305_v3 = vld [vmem:[%s909_s3 + $0xa0] sm:$0xff]  ;;  %v462_v37 = vshrl.u32 %v461_v36, 7  ;;  %v476_v43 = vand.u32 127, %v461_v36 }
  0x24   : > { %v307_v4 = vld [vmem:[%s909_s3 + $0xb0] sm:$0xff]  ;;  %v273_v5 = vld [vmem:[%s908_s2 + $0xa0] sm:$0xff]  ;;  %v611_v6 = vpack.c.bf16 %v276_v63, %v274_v62  ;;  %v310_v8 = vld [vmem:[%s909_s3 + $0xc8] sm:$0xff] }
  0x25   : > { %574 = vmatpush1.bf16.msra.mxu1 %v573_v52  ;;  %v275_v7 = vld [vmem:[%s908_s2 + $0xb0] sm:$0xff]  ;;  %v312_v9 = vld [vmem:[%s909_s3 + $0xd8] sm:$0xff]  ;;  %v278_v10 = vld [vmem:[%s908_s2 + $0xc8] sm:$0xff]  ;;  %v581_v12 = vpack.c.bf16 %v307_v4, %v305_v3  ;;  %v463_v38 = vsub.s32 0, %v462_v37  ;;  %v467_v40 = vsub.s32 1, %v462_v37  ;;  %vm477_vm0 = vcmp.lt.s32.totalorder %v476_v43, 8 }
  0x26   : > { %606 = vmatpush1.bf16.msra.mxu0 %v605_v53  ;;  %576 = vmatprep.subr.bf16.mxu1 %v575_v54  ;;  %v280_v11 = vld [vmem:[%s908_s2 + $0xd8] sm:$0xff]  ;;  %v613_v13 = vpack.c.bf16 %v275_v7, %v273_v5  ;;  %v583_v14 = vpack.c.bf16 %v312_v9, %v310_v8  ;;  %v309_v15 = vld [vmem:[%s909_s3 + $0xc0] sm:$0xff]  ;;  %v311_v16 = vld [vmem:[%s909_s3 + $0xd0] sm:$0xff] }
  0x27   : > { %608 = vmatprep.subr.bf16.mxu0 %v607_v58  ;;  %v277_v17 = vld [vmem:[%s908_s2 + $0xc0] sm:$0xff]  ;;  %v615_v18 = vpack.c.bf16 %v280_v11, %v278_v10  ;;  %v279_v19 = vld [vmem:[%s908_s2 + $0xd0] sm:$0xff]  ;;  %v314_v20 = vld [vmem:[%s909_s3 + $0xe8] sm:$0xff]  ;;  %v585_v24 = vpack.c.bf16 %v311_v16, %v309_v15 }
  0x28   : > { %v316_v21 = vld [vmem:[%s909_s3 + $0xf8] sm:$0xff]  ;;  %v282_v22 = vld [vmem:[%s908_s2 + $0xe8] sm:$0xff]  ;;  %v617_v25 = vpack.c.bf16 %v279_v19, %v277_v17  ;;  %v313_v27 = vld [vmem:[%s909_s3 + $0xe0] sm:$0xff] }
  0x29   : > { %578 = vmatpush1.bf16.msra.mxu1 %v577_v0  ;;  %v284_v23 = vld [vmem:[%s908_s2 + $0xf8] sm:$0xff]  ;;  %v587_v26 = vpack.c.bf16 %v316_v21, %v314_v20  ;;  %v315_v28 = vld [vmem:[%s909_s3 + $0xf0] sm:$0xff]  ;;  %v281_v30 = vld [vmem:[%s908_s2 + $0xe0] sm:$0xff] }
  0x2a   : > { %610 = vmatpush1.bf16.msra.mxu0 %v609_v1  ;;  %580 = vmatprep.subr.bf16.mxu1 %v579_v2  ;;  %v619_v29 = vpack.c.bf16 %v284_v23, %v282_v22  ;;  %v283_v31 = vld [vmem:[%s908_s2 + $0xf0] sm:$0xff]  ;;  %v589_v32 = vpack.c.bf16 %v315_v28, %v313_v27  ;;  %v252_v34 = vld [vmem:[#allocation2] sm:$0xff] }
  0x2b   : > { %612 = vmatprep.subr.bf16.mxu0 %v611_v6  ;;  %v621_v33 = vpack.c.bf16 %v283_v31, %v281_v30  ;;  %v251_v35 = vld [vmem:[%s693_s27] sm:$0xff] }
  0x2c   : > { %v459_v39 = vld [vmem:[%s910_s4] sm:$0x3] }
  0x2d   : > { %582 = vmatpush1.bf16.msra.mxu1 %v581_v12  ;;  %v464_v42 = vrot.slane %v459_v39, %v463_v38  ;;  %v468_v46 = vrot.slane %v459_v39, %v467_v40 }
  0x2e   : > { %614 = vmatpush1.bf16.msra.mxu0 %v613_v13  ;;  %584 = vmatprep.subr.bf16.mxu1 %v583_v14 }
  0x2f   : > { %616 = vmatprep.subr.bf16.mxu0 %v615_v18 }
  0x31   : > { %586 = vmatpush1.bf16.msra.mxu1 %v585_v24 }
  0x32   : > { %618 = vmatpush1.bf16.msra.mxu0 %v617_v25  ;;  %588 = vmatprep.subr.bf16.mxu1 %v587_v26 }
  0x33   : > { %620 = vmatprep.subr.bf16.mxu0 %v619_v29 }
  0x35   : > { %590 = vmatpush1.bf16.msra.mxu1 %v589_v32 }
  0x36   : > { %622 = vmatpush1.bf16.msra.mxu0 %v621_v33 }
  0x38   : > { %382 = vmatmul.mubr.f32.vlgmr.msra.gmra.mrb[0].mxu1 %v252_v34 }
  0x39   : > { %453 = vmatmul.mubr.f32.vlgmr.msra.gmra.mrb[0].mxu0 %v251_v35 }
 0x10b   : > { %v383_v41 = vpop.f32.mrb[0].mxu1 }
 0x10c   : > { %v454_v44 = vpop.f32.mrb[0].mxu0  ;;  %v385_v45 = vpop.f32.mrb[1].mxu1 }
 0x10d   : > { %v455_v47 = vadd.f32 %v454_v44, %v383_v41  ;;  %v456_v48 = vpop.f32.mrb[1].mxu0 }
 0x10e   : > { %v457_v49 = vadd.f32 %v456_v48, %v385_v45 }
 0x10f   : > { %v471_v50 = vadd.f32 %v464_v42, %v455_v47 }
 0x110   : > { %v472_v51 = vadd.f32 %v468_v46, %v457_v49 }
 0x111   : > { %473 = vst [vmem:[#allocation2] sm:$0xff] %v471_v50  ;;  %474 = vst [vmem:[%s912_s6] sm:$0xff] %v471_v50 }
 0x112   : > { %v478_v52 = vsel %vm477_vm0, %v472_v51, -1e+30 }
 0x113   : > { %479 = vmax.xlane.f32.xlu0 %v478_v52 }
 0x1a0   : > { %v480_v53 = vpop.xlane.xlu0 %479 }
 0x1a1   : > { %v481_v54 = vsub.f32 %v478_v52, %v480_v53 }
 0x1a3   : > { %v482_v55 = vmul.f32 1.442695, %v481_v54 }
 0x1a5   : > { %634 = vpow2.f32 %v482_v55 }
 0x1af   : > { %v635_v56 = vpop.eup %634 }
 0x1b0   : > { %484 = vadd.xlane.f32.xlu0 %v635_v56 }
 0x23d   : > { %v485_v57 = vpop.xlane.xlu0 %484 }
 0x23e   : > { %636 = vlog2.f32 %v485_v57 }
 0x248   : > { %v637_v58 = vpop.eup %636 }
 0x249   : > { %v487_v59 = vmul.f32 0.6931472, %v637_v58 }
 0x24b   : > { %v488_v60 = vsub.f32 %v481_v54, %v487_v59 }
 0x24d   : > { %489 = vst [vmem:[%s698_s30] sm:$0xff] %v488_v60 }
 0x24e PF: > { %s17_s21 = sadd.s32 1, %s644_s21  }
 0x24f   : > { %p14_p5 = scmp.ge.s32.totalorder %s17_s21, 10  }
 0x251   :  { %16 = sbr.rel (!%p14_p5) target bundleno = 1 (0x1), region = 82 }

</bundles_post_ra>
